<compile_context>
chip_gen: v5e
topology: v5e:2x2
jax: 0.10.0
libtpu: 0.0.40
codegen_flags: <defaults>
</compile_context>

<pallas_src>
import functools

import jax
import jax.numpy as jnp
from jax import lax
from jax.experimental import pallas as pl
from jax.experimental.pallas import tpu as pltpu


def _round_up(x, m):
    return (x + m - 1) // m * m


# ---------------------------------------------------------------------------
# Pass 1: streaming statistics over x.
#   x_ref   : (Cin, TM)   lane-dense tile of xT
#   gram_ref: (Cin, Cin)  accumulator, resident across the grid
#   xsum_ref: (Cin, 1)    accumulator, resident across the grid
# ---------------------------------------------------------------------------
def _stats_kernel(x_ref, gram_ref, xsum_ref):
    @pl.when(pl.program_id(0) == 0)
    def _init():
        gram_ref[...] = jnp.zeros_like(gram_ref)
        xsum_ref[...] = jnp.zeros_like(xsum_ref)

    x = x_ref[...]                                      # (Cin, TM) f32
    # X · Xᵀ : contraction over the lane (M) axis of both operands.
    gram_ref[...] += lax.dot_general(
        x, x, (((1,), (1,)), ((), ())), preferred_element_type=jnp.float32)
    xsum_ref[...] += jnp.sum(x, axis=1, keepdims=True)  # (Cin, 1)


# ---------------------------------------------------------------------------
# Pass 2: streaming apply (matmul + fused bias/BN/ReLU).
#   w_ref    : (R, Cin)  R = npos*Cout, row r = c*npos + p   (grid-invariant)
#   scale_ref: (R, 1)    gamma * rsqrt(var+eps), repeated per kernel position
#   shift_ref: (R, 1)    beta + (conv_bias - mean) * scale
#   x_ref    : (Cin, TM) lane-dense input tile
#   o_ref    : (R, TM)   lane-dense output tile
# ---------------------------------------------------------------------------
def _apply_kernel(w_ref, scale_ref, shift_ref, x_ref, o_ref):
    y = jnp.dot(w_ref[...], x_ref[...], preferred_element_type=jnp.float32)
    o_ref[...] = jnp.maximum(y * scale_ref[...] + shift_ref[...], 0.0).astype(o_ref.dtype)


def deconv2d_bn_forward(x_nchw, weight, bias, gamma, beta, eps=1e-5, block_m=2048):
    """weight: (Cin, Cout, KH, KW) as in torch.nn.ConvTranspose2d; stride == kernel_size."""
    N, Cin, H, W = x_nchw.shape
    _, Cout, KH, KW = weight.shape
    npos = KH * KW
    R = npos * Cout
    M = N * H * W
    f32 = jnp.float32

    # ---- layout: NCHW -> lane-dense xT (Cin, M), column m = n*H*W + h*W + w
    xT = jnp.transpose(x_nchw, (1, 0, 2, 3)).reshape(Cin, M).astype(f32)

    # ---- tile the M axis (lane axis): multiple of 128, padded with zeros
    tm = _round_up(min(block_m, _round_up(M, 128)), 128)
    Mp = _round_up(M, tm)
    if Mp != M:
        xT = jnp.pad(xT, ((0, 0), (0, Mp - M)))
    grid_m = Mp // tm

    # ------------------------------------------------------------------ pass 1
    vmem_stats = int(4 * (2 * Cin * tm + Cin * (Cin + 1)) + (12 << 20))
    gram, xsum = pl.pallas_call(
        _stats_kernel,
        out_shape=(jax.ShapeDtypeStruct((Cin, Cin), f32),
                   jax.ShapeDtypeStruct((Cin, 1), f32)),
        grid=(grid_m,),
        in_specs=[pl.BlockSpec((Cin, tm), lambda i: (0, i))],
        out_specs=(pl.BlockSpec((Cin, Cin), lambda i: (0, 0)),
                   pl.BlockSpec((Cin, 1), lambda i: (0, 0))),
        compiler_params=pltpu.CompilerParams(
            dimension_semantics=("arbitrary",),
            vmem_limit_bytes=vmem_stats),
    )(xT)

    # ---- recover BN batch statistics algebraically (tiny, plain JAX) --------
    # wk[k, p, c] = weight[k, c, kh, kw],  p = kh*KW + kw
    wk = jnp.transpose(weight, (0, 2, 3, 1)).reshape(Cin, npos, Cout).astype(f32)
    b = bias.astype(f32)
    g = gamma.astype(f32)
    be = beta.astype(f32)

    sx = xsum[:, 0]                                        # (Cin,)   Σ_m x
    count = float(M * npos)                                # outputs per channel

    dot_sw = jnp.einsum('k,kpc->pc', sx, wk)               # Σ_m x·w  per (p,c)
    quad = jnp.einsum('kpc,kl,lpc->pc', wk, gram, wk)      # wᵀ G w   per (p,c)
    dot_sw_sum = jnp.sum(dot_sw, axis=0)                   # (Cout,)

    s1 = dot_sw_sum + count * b                            # Σ y
    s2 = jnp.sum(quad, axis=0) + 2.0 * b * dot_sw_sum + count * b * b   # Σ y²

    mean = s1 / count
    var = jnp.maximum(s2 / count - mean * mean, 0.0)       # biased var, clamped
    inv = lax.rsqrt(var + eps)
    scale = g * inv                                        # (Cout,)
    shift = be + (b - mean) * scale                        # conv bias folded in

    # ---- per-row (r = c*npos + p) weight / scale / shift --------------------
    W_rows = jnp.transpose(wk, (2, 1, 0)).reshape(R, Cin)  # (R, Cin)
    scale_rows = jnp.repeat(scale, npos).reshape(R, 1)
    shift_rows = jnp.repeat(shift, npos).reshape(R, 1)

    # ------------------------------------------------------------------ pass 2
    vmem_apply = int(4 * (2 * (Cin + R) * tm + 2 * R * (Cin + 2)) + (12 << 20))
    cost = pl.CostEstimate(
        flops=int(2 * Mp * Cin * R + 3 * Mp * R),
        transcendentals=0,
        bytes_accessed=int(4 * (Cin * Mp + R * Mp + R * (Cin + 2))))

    yT = pl.pallas_call(
        _apply_kernel,
        out_shape=jax.ShapeDtypeStruct((R, Mp), f32),
        grid=(grid_m,),
        in_specs=[pl.BlockSpec((R, Cin), lambda i: (0, 0)),
                  pl.BlockSpec((R, 1), lambda i: (0, 0)),
                  pl.BlockSpec((R, 1), lambda i: (0, 0)),
                  pl.BlockSpec((Cin, tm), lambda i: (0, i))],
        out_specs=pl.BlockSpec((R, tm), lambda i: (0, i)),
        compiler_params=pltpu.CompilerParams(
            dimension_semantics=("parallel",),
            vmem_limit_bytes=vmem_apply),
        cost_estimate=cost,
    )(W_rows, scale_rows, shift_rows, xT)

    # ---- scatter back to NCHW ------------------------------------------------
    yT = yT[:, :M]                                         # drop M padding
    y6 = yT.reshape(Cout, KH, KW, N, H, W)
    out = jnp.transpose(y6, (3, 0, 4, 1, 5, 2)).reshape(N, Cout, H * KH, W * KW)
    return out


def _reference(x, weight, bias, gamma, beta, eps=1e-5):
    """Pure-JAX reference of ConvTranspose2d(k=2,s=2) + BN(train) + ReLU in NCHW."""
    N, Cin, H, W = x.shape
    _, Cout, KH, KW = weight.shape
    out = jnp.zeros((N, Cout, H * KH, W * KW), jnp.float32)
    for kh in range(KH):
        for kw in range(KW):
            contrib = jnp.einsum('nchw,cd->ndhw', x, weight[:, :, kh, kw])
            out = out.at[:, :, kh::KH, kw::KW].add(contrib)
    out = out + bias[None, :, None, None]
    mean = jnp.mean(out, axis=(0, 2, 3), keepdims=True)
    var = jnp.mean(out * out, axis=(0, 2, 3), keepdims=True) - mean * mean
    out = (out - mean) * lax.rsqrt(var + eps)
    out = out * gamma[None, :, None, None] + beta[None, :, None, None]
    return jnp.maximum(out, 0.0)


if __name__ == "__main__":
    key = jax.random.PRNGKey(0)
    k_w, k_b, k_x = jax.random.split(key, 3)

    N, Cin, Cout, H, W = 2, 4, 8, 16, 16
    KH = KW = 2  # kernel_size = strides = 2 (module defaults)

    weight = 0.1 * jax.random.normal(k_w, (Cin, Cout, KH, KW), jnp.float32)
    bias = 0.1 * jax.random.normal(k_b, (Cout,), jnp.float32)
    gamma = jnp.ones((Cout,), jnp.float32)    # BatchNorm2d default weight
    beta = jnp.zeros((Cout,), jnp.float32)    # BatchNorm2d default bias

    x = jax.random.normal(k_x, (N, Cin, H, W), jnp.float32)

    # block_m=128 -> grid of 4 steps over M=512, exercising the pipelined path.
    out = deconv2d_bn_forward(x, weight, bias, gamma, beta, block_m=128)
    out = jax.block_until_ready(out)

    ref = _reference(x, weight, bias, gamma, beta)
    assert out.shape == (N, Cout, H * KH, W * KW)
    assert jnp.allclose(out, ref, atol=5e-4, rtol=5e-4)

    print("KERNEL_OK")
</pallas_src>

<mosaic_0001>
module attributes {stable_mosaic.version = 11 : i64} {
  func.func @_stats_kernel(%arg0: i32, %arg1: memref<4x128xf32, #tpu.memory_space<vmem>>, %arg2: memref<4x4xf32, #tpu.memory_space<vmem>>, %arg3: memref<4x1xf32, #tpu.memory_space<vmem>>) attributes {dimension_semantics = [#tpu.dimension_semantics<arbitrary>], iteration_bounds = array<i64: 4>, scalar_prefetch = 0 : i64, scratch_operands = 0 : i64, tpu.core_type = #tpu.core_type<tc>, window_params = [{transform_indices = @transform_0, window_bounds = array<i64: 4, 128>}, {pipeline_mode = #tpu.pipeline_mode<synchronous>, transform_indices = @transform_1, window_bounds = array<i64: 4, 4>}, {pipeline_mode = #tpu.pipeline_mode<synchronous>, transform_indices = @transform_2, window_bounds = array<i64: 4, 1>}]} {
    %c0_i32 = arith.constant 0 : i32
    %0 = arith.cmpi eq, %arg0, %c0_i32 : i32
    %1 = arith.extui %0 : i1 to i32
    %c0_i32_0 = arith.constant 0 : i32
    %2 = arith.cmpi ne, %1, %c0_i32_0 : i32
    scf.if %2 {
      %cst_11 = arith.constant 0.000000e+00 : f32
      %13 = vector.broadcast %cst_11 : f32 to vector<4x4xf32>
      %c0_12 = arith.constant 0 : index
      %c0_13 = arith.constant 0 : index
      %14 = vector.load %arg2[%c0_12, %c0_13] : memref<4x4xf32, #tpu.memory_space<vmem>>, vector<4x4xf32>
      tpu.vector_store %arg2[%c0_12, %c0_13], %13 {strides = array<i32>} : memref<4x4xf32, #tpu.memory_space<vmem>>, vector<4x4xf32>,
      %cst_14 = arith.constant 0.000000e+00 : f32
      %15 = vector.broadcast %cst_14 : f32 to vector<4x1xf32>
      %c0_15 = arith.constant 0 : index
      %c0_16 = arith.constant 0 : index
      %16 = vector.load %arg3[%c0_15, %c0_16] : memref<4x1xf32, #tpu.memory_space<vmem>>, vector<4x1xf32>
      tpu.vector_store %arg3[%c0_15, %c0_16], %15 {strides = array<i32>} : memref<4x1xf32, #tpu.memory_space<vmem>>, vector<4x1xf32>,
    } else {
    }
    %c0 = arith.constant 0 : index
    %c0_1 = arith.constant 0 : index
    %3 = vector.load %arg1[%c0, %c0_1] : memref<4x128xf32, #tpu.memory_space<vmem>>, vector<4x128xf32>
    %c0_2 = arith.constant 0 : index
    %c0_3 = arith.constant 0 : index
    %4 = vector.load %arg2[%c0_2, %c0_3] : memref<4x4xf32, #tpu.memory_space<vmem>>, vector<4x4xf32>
    %cst = arith.constant dense<0.000000e+00> : vector<4x4xf32>
    %5 = tpu.matmul %3, %3, %cst {dimension_numbers = #tpu.dot_dimension_numbers<[1], [1], [0], [0], [0, 0, 1, 0], [], []>} : vector<4x128xf32>, vector<4x128xf32>, vector<4x4xf32> -> vector<4x4xf32>
    %6 = arith.addf %4, %5 : vector<4x4xf32>
    %c0_4 = arith.constant 0 : index
    %c0_5 = arith.constant 0 : index
    %7 = vector.load %arg2[%c0_4, %c0_5] : memref<4x4xf32, #tpu.memory_space<vmem>>, vector<4x4xf32>
    tpu.vector_store %arg2[%c0_4, %c0_5], %6 {strides = array<i32>} : memref<4x4xf32, #tpu.memory_space<vmem>>, vector<4x4xf32>,
    %c0_6 = arith.constant 0 : index
    %c0_7 = arith.constant 0 : index
    %8 = vector.load %arg3[%c0_6, %c0_7] : memref<4x1xf32, #tpu.memory_space<vmem>>, vector<4x1xf32>
    %cst_8 = arith.constant dense<0.000000e+00> : vector<4xf32>
    %9 = vector.multi_reduction <add>, %3, %cst_8 [1] : vector<4x128xf32> to vector<4xf32>
    %10 = vector.shape_cast %9 : vector<4xf32> to vector<4x1xf32>
    %11 = arith.addf %8, %10 : vector<4x1xf32>
    %c0_9 = arith.constant 0 : index
    %c0_10 = arith.constant 0 : index
    %12 = vector.load %arg3[%c0_9, %c0_10] : memref<4x1xf32, #tpu.memory_space<vmem>>, vector<4x1xf32>
    tpu.vector_store %arg3[%c0_9, %c0_10], %11 {strides = array<i32>} : memref<4x1xf32, #tpu.memory_space<vmem>>, vector<4x1xf32>,
    return
  }
  func.func @transform_0(%arg0: i32) -> (i32, i32) {
    %c0_i32 = arith.constant 0 : i32
    %c0_i32_0 = arith.constant 0 : i32
    return %c0_i32, %arg0 : i32, i32
  }
  func.func @transform_1(%arg0: i32) -> (i32, i32) {
    %c0_i32 = arith.constant 0 : i32
    %c0_i32_0 = arith.constant 0 : i32
    %c0_i32_1 = arith.constant 0 : i32
    return %c0_i32, %c0_i32_0 : i32, i32
  }
  func.func @transform_2(%arg0: i32) -> (i32, i32) {
    %c0_i32 = arith.constant 0 : i32
    %c0_i32_0 = arith.constant 0 : i32
    %c0_i32_1 = arith.constant 0 : i32
    return %c0_i32, %c0_i32_0 : i32, i32
  }
}

</mosaic_0001>

<bundles_post_ra>
// kernel: tpu_custom_call.1
= control target key start
LH: loop header
LB: loop body
LE: loop exit
PB: predicated region body
PF: predicated region fallthrough
CT: control target
= control target key end

     0   :  { %8 = vsyncpa [#allocation3], 0  ;;  %s530_s0 = inlined_call_operand.hbm [shape: f32[4,512], index: 0, kind: input, shape index: {}]   ;;  %s531_s1 = inlined_call_operand.hbm [shape: f32[4,4], index: 1, kind: output, shape index: {0}]   ;;  %s532_s2 = inlined_call_operand.vmem [shape: f32[4,1], index: 2, kind: output, shape index: {1}]  }
   0x1   :  { %10 = vsyncpa [#allocation3 + $0x1], 0 }
   0x2   :  { %11 = vsyncpa [#allocation4], 0  ;;  %s427_s9 = smov 0   ;;  %s429_s10 = smov 0  }
   0x3   :  { %s431_s11 = smov 0   ;;  %s433_s12 = smov 0  }
   0x4 LB: > { %s446_s13 = sadd.s32 4294967295, %s408_s12   ;;  %s449_s14 = sadd.s32 1, %s408_s12   ;;  %s408_s12 = sphi %s433_s12, %s539_s12   ;;  %s404_s11 = sphi %s431_s11, %s538_s11   ;;  %s400_s10 = sphi %s429_s10, %s537_s10   ;;  %s396_s9 = sphi %s427_s9, %s536_s9  }
   0x5   : > { %s21_s15 = ssub.s32 %s408_s12, %s449_s14  ;;  %s24_s16 = sadd.s32 1, %s404_s11 }
   0x6   : > { %p22_p0 = scmp.eq.s32.totalorder %s21_s15, 0  ;;  %p31_p1 = scmp.ne.s32.totalorder %s404_s11, %s400_s10 }
   0x7   : > { %p32_p2 = scmp.eq.s32.totalorder %s408_s12, 0  ;;  %p37_p3 = scmp.ne.s32.totalorder %s400_s10, %s396_s9 }
   0x8   : > { %s459_s17 = scalar_select %p22_p0, %s404_s11, %s24_s16  }
   0x9   : > { %p461_p4 = por %p32_p2, %p31_p1  ;;  %p38_p5 = scmp.eq.s32.totalorder %s446_s13, 0 }
   0xa   : > { %p275_p6 = scmp.lt.s32.totalorder %s408_s12, 4  ;;  %s103_s20 = sand.u32 1, %s404_s11  }
   0xb   : > { %p467_p7 = por %p38_p5, %p37_p3  ;;  %s256_s21 = sshll.u32 %s103_s20, 2 }
   0xc   : > { %s257_s22 = sshll.u32 %s408_s12, 2  ;;  %s107_s26 = scalar_lea.vmem [#allocation2], %s256_s21 }
   0xd   : > { %s111_s25 = scalar_lea.hbm %s530_s0, %s257_s22  ;;  %s115_s27 = sshll.u32 %s107_s26, 4  ;;  %s116_s27 = int_to_ptr.vmem [resolvable:$true] %s115_s27 }
   0xe   : > { %s113_s28 = sshll.u32 %s111_s25, 4  ;;  %p478_p8 = pnand %p275_p6, %p461_p4  ;;  %s114_s28 = int_to_ptr.hbm [resolvable:$true] %s113_s28 }
   0xf   : > { %p258_p9 = scmp.ge.s32.totalorder %s408_s12, 1  ;;  %p120_p10 = scmp.lt.s32.totalorder %s408_s12, 5 }
  0x10   : > { %s104_s30 = scalar_lea.sflag [#allocation3], %s103_s20  ;;  %s312_s3 = sshra.s32 %s114_s28, 4  ;;  %s313_s3 = int_to_ptr.hbm [resolvable:$true] %s312_s3 }
  0x11   : > { %s314_s4 = scalar_lea.hbm %s313_s3, 4  ;;  %p316_p12 = pneg %p478_p8 }
  0x12   : > { %p315_p11 = scmp.ne.s32.totalorder %s313_s3, %s314_s4  ;;  %s319_s7 = scalar_lea.hbm %s530_s0, 16 }
  0x13   : > { %p320_p1 = scmp.lt.s32.totalorder %s313_s3, %s530_s0  ;;  %p321_p2 = scmp.lt.s32.totalorder %s319_s7, %s314_s4 }
  0x14   : > { %p317_p13 = pnand %p316_p12, %p315_p11 }
  0x15   : > { %p322_p3 = por %p321_p2, %p320_p1 }
  0x16   : > { %p318_p0 = pneg %p317_p13 }
  0x18   : > { %p323_p4 = pnand %p322_p3, %p318_p0 }
  0x1a   : > { %326 = shalt.err (!%p323_p4)
}
  0x1b   : > { %274 = dma.hbm_to_vmem [thread:$0]  (!%p478_p8), %s114_s28, 64, %s116_s27, %s104_s30  }
  0x1c   : > { %p121_p5 = pnand %p258_p9, %p120_p10 }
  0x1d   : > { %s126_s15 = sand.u32 (!%p121_p5), 1, %s400_s10  }
  0x1e   : > { %124 = sbr.rel (%p121_p5) target bundleno = 182 (0xb6), region = 24  ;;  %s259_s16 = sshll.u32 (!%p121_p5), %s126_s15, 2 }
  0x1f   : > { %s127_s18 = scalar_lea.sflag (!%p121_p5), [#allocation3], %s126_s15  ;;  %s130_s20 = scalar_lea.vmem (!%p121_p5), [#allocation2], %s259_s16 }
  0x23   : > { %387 = dma.done.wait (%p467_p7), %s127_s18, 64  }
  0x24   : > { %389 = vsyncadd (%p467_p7), %s127_s18, 4294967232  ;;  %p260_p6 = scmp.ne.s32.totalorder %s446_s13, 0 }
  0x26   : > { %150 = sbr.rel (%p260_p6) target bundleno = 46 (0x2e), region = 32 }
  0x2b   : > { %vm151_vm0 = vcmask 27648   ;;  %vm153_vm1 = vcmask 3072   ;;  %v410_v0 = vmov 0.0  }
  0x2c   : > { %152 = vst.msk [vmem:[#allocation5] sm:$0xf] %vm151_vm0, %v410_v0 }
  0x2d   : > { %154 = vst.msk [vmem:[%s532_s2] sm:$0xf] %vm153_vm1, %v410_v0 }
  0x2e PF: > { %v155_v1 = vld [vmem:[%s130_s20] sm:$0xf]  ;;  %vm181_vm2 = vcmask 1043456   ;;  %vm186_vm3 = vcmask 3072   ;;  %s411_s25 = smov [#allocation5]   ;;  %s196_s29 = sshll.u32 %s531_s1, 4  ;;  %s197_s29 = int_to_ptr.hbm [resolvable:$true] %s196_s29 }
  0x2f   : > { %172 = vmatpush.xpose.msra.mxu0 %v155_v1  ;;  %v182_v2 = vsel %vm181_vm2, %v155_v1, 0.0  ;;  %s194_s26 = sshll.u32 %s411_s25, 4  ;;  %vm178_vm4 = vcmask 27648   ;;  %p276_p7 = scmp.eq.s32.totalorder %s446_s13, 3  ;;  %s195_s26 = int_to_ptr.vmem [resolvable:$true] %s194_s26 }
  0x30   : > { %183 = vadd.xlane.f32.xlu0 %v182_v2 }
  0x32   : > { %173 = vmatmul.f32.vlgmr.msra.gmra.mxu0 %v155_v1 }
  0x33   : > { %v156_v6 = vld [vmem:[#allocation5] sm:$0xf] }
  0x34   : > { %v180_v3 = vld [vmem:[%s532_s2] sm:$0xf] }
  0xa3   : > { %v184_v4 = vpop.xlane.xlu0 %183 }
  0xa4   : > { %v185_v5 = vadd.f32 %v184_v4, %v180_v3 }
  0xa6   : > { %187 = vst.msk [vmem:[%s532_s2] sm:$0xf] %vm186_vm3, %v185_v5 }
  0xaf   : > { %v174_v7 = vpop.f32.mrf.mxu0 }
  0xb0   : > { %v177_v8 = vadd.f32 %v174_v7, %v156_v6 }
  0xb2   : > { %179 = vst.msk [vmem:[#allocation5] sm:$0xf] %vm178_vm4, %v177_v8 }
  0xb3   : > { %268 = dma.vmem_to_hbm [thread:$0]  (%p276_p7), %s195_s26, 64, %s197_s29, [#allocation4]  }
  0xb4   : > { %391 = dma.done.wait (%p276_p7), [#allocation4], 64  }
  0xb5   : > { %393 = vsyncadd (%p276_p7), [#allocation4], 4294967232 }
  0xb6 PF: > { %p14_p8 = scmp.ge.s32.totalorder %s449_s14, 6   ;;  %s536_s9 = smov %s400_s10 }
  0xb7   : > { %s537_s10 = smov %s404_s11  ;;  %s538_s11 = smov %s459_s17 }
  0xb8   : > { %s539_s12 = smov %s449_s14  ;;  %16 = sbr.rel (!%p14_p8) target bundleno = 4 (0x4), region = 73 }
  0xbd   :  { %216 = vsyncpa [#allocation3], 1 }
  0xbe   :  { %218 = vsyncpa [#allocation3 + $0x1], 1 }
  0xbf   :  { %219 = vsyncpa [#allocation4], 1 }
  0xc0   :  { %221 = vsyncpa [#allocation4 + $0x1], 1 }

</bundles_post_ra>
